<compile_context>
chip_gen: v7x
topology: tpu7x:2x2x1
jax: 0.10.0
libtpu: 0.0.40
codegen_flags: <defaults>
</compile_context>

<pallas_src>
import numpy as np

import jax
import jax.numpy as jnp
from jax.experimental import pallas as pl
from jax.experimental.pallas import tpu as pltpu


# ----------------------------------------------------------------------------
# Fused Pallas kernel: all six layers, 9 MXU dots total
# ----------------------------------------------------------------------------
def _autoencoder_kernel(x_ref,
                        w1_ref, b1_ref, m1_ref,
                        w2_ref, b2_ref, m2_ref,
                        w3_ref, b3_ref, m3_ref,
                        w4_ref, s4_ref, b4_ref,
                        w5_ref, s5_ref, b5_ref,
                        w6_ref, s6_ref, b6_ref,
                        o_ref,
                        act1, act2, gbuf, zbuf):
    f32 = jnp.float32

    def conv_layer(src_ref, w_ref, b_ref, m_ref):
        # src_ref: [1 + 2*M, K]; row 0 is a zero guard row, rows 1.. hold the
        # activation.  Vertical taps di=0,1,2 of Conv2d(k=3, s=2, p=1) become
        # strided sublane loads; horizontal taps + channel mixing are folded
        # into w_ref ([3K, N]) on the host.  m_ref zeroes the di=0 tap at the
        # top row of every sample (padding row).
        m = m_ref.shape[0]
        k = src_ref.shape[1]
        g0 = src_ref[pl.ds(0, m, stride=2), :] * m_ref[...]   # top tap (masked)
        g1 = src_ref[pl.ds(1, m, stride=2), :]                # centre tap
        g2 = src_ref[pl.ds(2, m, stride=2), :]                # bottom tap
        gbuf[0:m, 0:k] = g0
        gbuf[0:m, k:2 * k] = g1
        gbuf[0:m, 2 * k:3 * k] = g2
        y = jnp.dot(gbuf[0:m, 0:3 * k], w_ref[...],
                    preferred_element_type=f32) + b_ref[...]
        return jnp.maximum(y, 0.0)

    def convt_layer(x, w_ref, s_ref, b_ref):
        # ConvTranspose2d(k=3, s=2, p=1, output_padding=1):
        #   one wide dot over the three vertical taps (X @ [W0|W1|W2]),
        #   restack the tap blocks along rows in a VMEM scratch,
        #   one row-scatter dot with the host-built S_cat (boundaries folded in).
        p = x.shape[0]
        n = b_ref.shape[1]
        zw = jnp.dot(x, w_ref[...], preferred_element_type=f32)   # [P, 3N]
        for di in range(3):
            zbuf[di * p:(di + 1) * p, 0:n] = zw[:, di * n:(di + 1) * n]
        return jnp.dot(s_ref[...], zbuf[0:3 * p, 0:n],
                       preferred_element_type=f32) + b_ref[...]

    # ---------------- encoder ----------------
    y1 = conv_layer(x_ref, w1_ref, b1_ref, m1_ref)
    act1[0:1, :] = jnp.zeros((1, act1.shape[1]), f32)   # guard row
    act1[1:, :] = y1
    y2 = conv_layer(act1, w2_ref, b2_ref, m2_ref)
    act2[0:1, :] = jnp.zeros((1, act2.shape[1]), f32)   # guard row
    act2[1:, :] = y2
    y3 = conv_layer(act2, w3_ref, b3_ref, m3_ref)

    # ---------------- decoder ----------------
    y4 = jnp.maximum(convt_layer(y3, w4_ref, s4_ref, b4_ref), 0.0)
    y5 = jnp.maximum(convt_layer(y4, w5_ref, s5_ref, b5_ref), 0.0)
    y6 = jax.nn.sigmoid(convt_layer(y5, w6_ref, s6_ref, b6_ref))
    o_ref[...] = y6.astype(o_ref.dtype)


def _full_spec(shape):
    ndim = len(shape)

    def index_map():
        return (0,) * ndim

    return pl.BlockSpec(shape, index_map)


# ----------------------------------------------------------------------------
# Host-side (init-time) constant builders — exact numpy, hoisted out of forward
# ----------------------------------------------------------------------------
def init_params(key):
    ks = jax.random.split(key, 12)
    scale = 0.1

    def w(k, shape):
        return scale * jax.random.normal(k, shape, jnp.float32)

    return {
        # encoder: Conv2d weights are [out_c, in_c, kh, kw]
        "e1_w": w(ks[0], (16, 3, 3, 3)),  "e1_b": w(ks[1], (16,)),
        "e2_w": w(ks[2], (8, 16, 3, 3)),  "e2_b": w(ks[3], (8,)),
        "e3_w": w(ks[4], (4, 8, 3, 3)),   "e3_b": w(ks[5], (4,)),
        # decoder: ConvTranspose2d weights are [in_c, out_c, kh, kw]
        "d1_w": w(ks[6], (4, 8, 3, 3)),   "d1_b": w(ks[7], (8,)),
        "d2_w": w(ks[8], (8, 16, 3, 3)),  "d2_b": w(ks[9], (16,)),
        "d3_w": w(ks[10], (16, 3, 3, 3)), "d3_b": w(ks[11], (3,)),
    }


def prepare_inputs(params, batch, height, width):
    """Fold stride / padding / output_padding / taps / channel mixing into dense
    per-layer constants (run once at init).

    Conv layer  -> (W_big [3K, N], bias_row [1, N], mask_col [M, 1]):
        OUT = relu( [G0|G1|G2] @ W_big + bias ),  G_di from strided row taps.
    ConvT layer -> (W_wide [K, 3N], S_cat [M, 3P], bias_row [1, N]):
        OUT = act( S_cat @ vstack_di( X @ W_wide[:, di*N:(di+1)*N] ) + bias ).
    Final layer's N is zero-padded to a multiple of 128 (lane-dense output)."""
    layer_cfg = [
        ("conv",  "e1_w", "e1_b"),
        ("conv",  "e2_w", "e2_b"),
        ("conv",  "e3_w", "e3_b"),
        ("convt", "d1_w", "d1_b"),
        ("convt", "d2_w", "d2_b"),
        ("convt", "d3_w", "d3_b"),
    ]
    consts = []
    h, w = height, width
    for idx, (kind, wk, bk) in enumerate(layer_cfg):
        wgt = np.asarray(params[wk], dtype=np.float32)
        bias = np.asarray(params[bk], dtype=np.float32)

        if kind == "conv":  # Conv2d k=3, stride=2, pad=1
            o_ch, c_ch = wgt.shape[0], wgt.shape[1]
            h_out, w_out = h // 2, w // 2
            col = np.zeros((3, w, w_out), np.float32)   # col[dj, ij, oj]
            for dj in range(3):
                for oj in range(w_out):
                    ij = 2 * oj + dj - 1
                    if 0 <= ij < w:
                        col[dj, ij, oj] = 1.0
            # W[di, ij*Cin + c, oj*Cout + o] = wgt[o, c, di, dj], ij = 2*oj+dj-1
            w_t = np.einsum("dxy,ocid->ixcyo", col, wgt)
            w_big = w_t.reshape(3 * w * c_ch, w_out * o_ch).astype(np.float32)
            b_row = np.tile(bias, w_out).reshape(1, w_out * o_ch).astype(np.float32)
            mcol = np.ones((batch * h_out, 1), np.float32)
            mcol[::h_out] = 0.0           # zero the top (di=0) tap at oi == 0
            consts += [w_big, b_row, mcol]
        else:               # ConvTranspose2d k=3, stride=2, pad=1, out_pad=1
            c_ch, o_ch = wgt.shape[0], wgt.shape[1]
            h_out, w_out = 2 * h, 2 * w
            n = w_out * o_ch
            n_pad = n if idx < len(layer_cfg) - 1 else -(-n // 128) * 128
            col = np.zeros((3, w, w_out), np.float32)
            for dj in range(3):
                for ij in range(w):
                    oj = 2 * ij - 1 + dj
                    if 0 <= oj < w_out:
                        col[dj, ij, oj] = 1.0
            # W[di, ij*Cin + c, oj*Cout + o] = wgt[c, o, di, dj], oj = 2*ij-1+dj
            w_t = np.einsum("dxy,coid->ixcyo", col, wgt).reshape(3, w * c_ch, n)
            wt_pad = np.zeros((3, w * c_ch, n_pad), np.float32)
            wt_pad[:, :, :n] = w_t
            w_wide = np.concatenate([wt_pad[0], wt_pad[1], wt_pad[2]], axis=1)
            # row scatter (vertical stride-2 upsample + boundaries), per sample
            s_blk = np.zeros((3, h_out, h), np.float32)
            for di in range(3):
                for ii in range(h):
                    oi = 2 * ii - 1 + di
                    if 0 <= oi < h_out:
                        s_blk[di, oi, ii] = 1.0
            eye_b = np.eye(batch, dtype=np.float32)
            s_cat = np.concatenate(
                [np.kron(eye_b, s_blk[di]) for di in range(3)], axis=1)
            b_row = np.zeros((1, n_pad), np.float32)
            b_row[0, :n] = np.tile(bias, w_out)
            consts += [w_wide.astype(np.float32),
                       s_cat.astype(np.float32),
                       b_row]
        h, w = h_out, w_out
    return tuple(jnp.asarray(c) for c in consts)


# ----------------------------------------------------------------------------
# Forward: one fused pallas_call
# ----------------------------------------------------------------------------
def autoencoder_forward_rows(x_rows_guarded, prepared):
    """Row-layout entry point: x is [1 + B*H, W*C_in] float32 with a zero guard
    row at index 0.  Returns [B*H, N_pad] rows whose first W*3 columns hold the
    sigmoid output image (N_pad = 128-padded)."""
    conv_c = [prepared[0:3], prepared[3:6], prepared[6:9]]
    convt_c = [prepared[9:12], prepared[12:15], prepared[15:18]]

    m1, n1 = conv_c[0][2].shape[0], conv_c[0][0].shape[1]
    m2, n2 = conv_c[1][2].shape[0], conv_c[1][0].shape[1]
    gbuf_rows = max(c[2].shape[0] for c in conv_c)
    gbuf_cols = max(c[0].shape[0] for c in conv_c)
    zbuf_rows = max(c[1].shape[1] for c in convt_c)
    zbuf_cols = max(c[2].shape[1] for c in convt_c)
    m_out = convt_c[-1][1].shape[0]
    n_out = convt_c[-1][2].shape[1]

    inputs = (x_rows_guarded,) + tuple(prepared)

    flops = 0
    for w_big, b_row, mcol in conv_c:
        flops += 2 * mcol.shape[0] * w_big.shape[0] * w_big.shape[1]
    for w_wide, s_cat, b_row in convt_c:
        p = s_cat.shape[1] // 3
        flops += 2 * p * w_wide.shape[0] * w_wide.shape[1]
        flops += 2 * s_cat.shape[0] * s_cat.shape[1] * b_row.shape[1]
    bytes_accessed = sum(int(a.size) * 4 for a in inputs) + m_out * n_out * 4

    return pl.pallas_call(
        _autoencoder_kernel,
        out_shape=jax.ShapeDtypeStruct((m_out, n_out), jnp.float32),
        in_specs=[_full_spec(a.shape) for a in inputs],
        out_specs=_full_spec((m_out, n_out)),
        scratch_shapes=[
            pltpu.VMEM((1 + m1, n1), jnp.float32),             # act1 (guarded)
            pltpu.VMEM((1 + m2, n2), jnp.float32),             # act2 (guarded)
            pltpu.VMEM((gbuf_rows, gbuf_cols), jnp.float32),   # G_big assembly
            pltpu.VMEM((zbuf_rows, zbuf_cols), jnp.float32),   # tap restack
        ],
        cost_estimate=pl.CostEstimate(
            flops=int(flops),
            transcendentals=int(m_out * n_out),
            bytes_accessed=int(bytes_accessed),
        ),
        # Actual live footprint is well under 1 MiB; small scoped budget
        # (review opt #7 — matters on v7x's 64 MiB VMEM).
        compiler_params=pltpu.CompilerParams(vmem_limit_bytes=4 * 1024 * 1024),
    )(*inputs)


def autoencoder_forward(x_nchw, prepared):
    """NCHW -> NCHW wrapper matching the PyTorch module.  The transposes here are
    wrapper-side XLA ops; callers that can produce / consume the [B*H, W*C] row
    layout should call autoencoder_forward_rows directly (review opt #6)."""
    b, c_in, h, w = x_nchw.shape
    x_rows = jnp.transpose(x_nchw, (0, 2, 3, 1)).reshape(b * h, w * c_in)
    x_g = jnp.concatenate(
        [jnp.zeros((1, w * c_in), x_rows.dtype), x_rows], axis=0)
    out_rows = autoencoder_forward_rows(x_g, prepared)
    out_nhwc = out_rows[:, : w * 3].reshape(b, h, w, 3)
    return jnp.transpose(out_nhwc, (0, 3, 1, 2))  # NHWC -> NCHW


# ----------------------------------------------------------------------------
# Pure-JAX reference (lax convs) used to sanity-check the Pallas path
# ----------------------------------------------------------------------------
def _ref_forward(x_nchw, p):
    dn = ("NCHW", "OIHW", "NCHW")

    def conv(x, w, b):
        y = jax.lax.conv_general_dilated(x, w, (2, 2), ((1, 1), (1, 1)),
                                         dimension_numbers=dn)
        return y + b.reshape(1, -1, 1, 1)

    def convT(x, w, b):
        wf = jnp.transpose(jnp.flip(w, (2, 3)), (1, 0, 2, 3))
        y = jax.lax.conv_general_dilated(x, wf, (1, 1), ((1, 2), (1, 2)),
                                         lhs_dilation=(2, 2),
                                         dimension_numbers=dn)
        return y + b.reshape(1, -1, 1, 1)

    x = jax.nn.relu(conv(x_nchw, p["e1_w"], p["e1_b"]))
    x = jax.nn.relu(conv(x, p["e2_w"], p["e2_b"]))
    x = jax.nn.relu(conv(x, p["e3_w"], p["e3_b"]))
    x = jax.nn.relu(convT(x, p["d1_w"], p["d1_b"]))
    x = jax.nn.relu(convT(x, p["d2_w"], p["d2_b"]))
    x = jax.nn.sigmoid(convT(x, p["d3_w"], p["d3_b"]))
    return x


if __name__ == "__main__":
    key = jax.random.PRNGKey(0)
    k_x, k_p = jax.random.split(key)

    x = jax.random.normal(k_x, (2, 3, 16, 16), jnp.float32)  # NCHW like PyTorch
    params = init_params(k_p)

    # One-time weight folding (conv/convT -> per-layer dense matrices).
    prepared = prepare_inputs(params, batch=2, height=16, width=16)

    fwd = jax.jit(autoencoder_forward)
    out = jax.block_until_ready(fwd(x, prepared))

    assert out.shape == (2, 3, 16, 16), out.shape

    ref = jax.block_until_ready(_ref_forward(x, params))
    assert jnp.allclose(out, ref, atol=1e-5, rtol=1e-5), float(jnp.abs(out - ref).max())

    print("KERNEL_OK")
</pallas_src>

<mosaic_0001>
module attributes {stable_mosaic.version = 11 : i64} {
  func.func @_autoencoder_kernel(%arg0: memref<33x48xf32, #tpu.memory_space<vmem>>, %arg1: memref<144x128xf32, #tpu.memory_space<vmem>>, %arg2: memref<1x128xf32, #tpu.memory_space<vmem>>, %arg3: memref<16x1xf32, #tpu.memory_space<vmem>>, %arg4: memref<384x32xf32, #tpu.memory_space<vmem>>, %arg5: memref<1x32xf32, #tpu.memory_space<vmem>>, %arg6: memref<8x1xf32, #tpu.memory_space<vmem>>, %arg7: memref<96x8xf32, #tpu.memory_space<vmem>>, %arg8: memref<1x8xf32, #tpu.memory_space<vmem>>, %arg9: memref<4x1xf32, #tpu.memory_space<vmem>>, %arg10: memref<8x96xf32, #tpu.memory_space<vmem>>, %arg11: memref<8x12xf32, #tpu.memory_space<vmem>>, %arg12: memref<1x32xf32, #tpu.memory_space<vmem>>, %arg13: memref<32x384xf32, #tpu.memory_space<vmem>>, %arg14: memref<16x24xf32, #tpu.memory_space<vmem>>, %arg15: memref<1x128xf32, #tpu.memory_space<vmem>>, %arg16: memref<128x384xf32, #tpu.memory_space<vmem>>, %arg17: memref<32x48xf32, #tpu.memory_space<vmem>>, %arg18: memref<1x128xf32, #tpu.memory_space<vmem>>, %arg19: memref<32x128xf32, #tpu.memory_space<vmem>>, %arg20: memref<17x128xf32, #tpu.memory_space<vmem>>, %arg21: memref<9x32xf32, #tpu.memory_space<vmem>>, %arg22: memref<16x384xf32, #tpu.memory_space<vmem>>, %arg23: memref<48x128xf32, #tpu.memory_space<vmem>>) attributes {dimension_semantics = [], scalar_prefetch = 0 : i64, scratch_operands = 4 : i64, tpu.core_type = #tpu.core_type<tc>} {
    %c0 = arith.constant 0 : index
    %c0_0 = arith.constant 0 : index
    %0 = tpu.strided_load %arg0[%c0, %c0_0] {strides = array<i32: 2, 1>} : memref<33x48xf32, #tpu.memory_space<vmem>>, vector<16x48xf32>
    %c0_1 = arith.constant 0 : index
    %c0_2 = arith.constant 0 : index
    %1 = vector.load %arg3[%c0_1, %c0_2] : memref<16x1xf32, #tpu.memory_space<vmem>>, vector<16x1xf32>
    %2 = vector.broadcast %1 : vector<16x1xf32> to vector<16x48xf32>
    %3 = arith.mulf %0, %2 : vector<16x48xf32>
    %c1 = arith.constant 1 : index
    %c0_3 = arith.constant 0 : index
    %4 = tpu.strided_load %arg0[%c1, %c0_3] {strides = array<i32: 2, 1>} : memref<33x48xf32, #tpu.memory_space<vmem>>, vector<16x48xf32>
    %c2 = arith.constant 2 : index
    %c0_4 = arith.constant 0 : index
    %5 = tpu.strided_load %arg0[%c2, %c0_4] {strides = array<i32: 2, 1>} : memref<33x48xf32, #tpu.memory_space<vmem>>, vector<16x48xf32>
    %c0_5 = arith.constant 0 : index
    %c0_6 = arith.constant 0 : index
    %6 = vector.load %arg22[%c0_5, %c0_6] : memref<16x384xf32, #tpu.memory_space<vmem>>, vector<16x48xf32>
    tpu.vector_store %arg22[%c0_5, %c0_6], %3 {strides = array<i32>} : memref<16x384xf32, #tpu.memory_space<vmem>>, vector<16x48xf32>,
    %c0_7 = arith.constant 0 : index
    %c48 = arith.constant 48 : index
    %7 = vector.load %arg22[%c0_7, %c48] : memref<16x384xf32, #tpu.memory_space<vmem>>, vector<16x48xf32>
    tpu.vector_store %arg22[%c0_7, %c48], %4 {strides = array<i32>} : memref<16x384xf32, #tpu.memory_space<vmem>>, vector<16x48xf32>,
    %c0_8 = arith.constant 0 : index
    %c96 = arith.constant 96 : index
    %8 = vector.load %arg22[%c0_8, %c96] : memref<16x384xf32, #tpu.memory_space<vmem>>, vector<16x48xf32>
    tpu.vector_store %arg22[%c0_8, %c96], %5 {strides = array<i32>} : memref<16x384xf32, #tpu.memory_space<vmem>>, vector<16x48xf32>,
    %c0_9 = arith.constant 0 : index
    %c0_10 = arith.constant 0 : index
    %9 = vector.load %arg22[%c0_9, %c0_10] : memref<16x384xf32, #tpu.memory_space<vmem>>, vector<16x144xf32>
    %c0_11 = arith.constant 0 : index
    %c0_12 = arith.constant 0 : index
    %10 = vector.load %arg1[%c0_11, %c0_12] : memref<144x128xf32, #tpu.memory_space<vmem>>, vector<144x128xf32>
    %cst = arith.constant dense<0.000000e+00> : vector<16x128xf32>
    %11 = tpu.matmul %9, %10, %cst {dimension_numbers = #tpu.dot_dimension_numbers<[1], [0], [0], [1], [0, 0, 1, 1], [], []>} : vector<16x144xf32>, vector<144x128xf32>, vector<16x128xf32> -> vector<16x128xf32>
    %c0_13 = arith.constant 0 : index
    %c0_14 = arith.constant 0 : index
    %12 = vector.load %arg2[%c0_13, %c0_14] : memref<1x128xf32, #tpu.memory_space<vmem>>, vector<1x128xf32>
    %13 = vector.broadcast %12 : vector<1x128xf32> to vector<16x128xf32>
    %14 = arith.addf %11, %13 : vector<16x128xf32>
    %cst_15 = arith.constant 0.000000e+00 : f32
    %15 = vector.broadcast %cst_15 : f32 to vector<16x128xf32>
    %16 = arith.maximumf %14, %15 : vector<16x128xf32>
    %cst_16 = arith.constant 0.000000e+00 : f32
    %17 = vector.broadcast %cst_16 : f32 to vector<1x128xf32>
    %c0_17 = arith.constant 0 : index
    %c0_18 = arith.constant 0 : index
    %18 = vector.load %arg20[%c0_17, %c0_18] : memref<17x128xf32, #tpu.memory_space<vmem>>, vector<1x128xf32>
    tpu.vector_store %arg20[%c0_17, %c0_18], %17 {strides = array<i32>} : memref<17x128xf32, #tpu.memory_space<vmem>>, vector<1x128xf32>,
    %c1_19 = arith.constant 1 : index
    %c0_20 = arith.constant 0 : index
    %19 = vector.load %arg20[%c1_19, %c0_20] : memref<17x128xf32, #tpu.memory_space<vmem>>, vector<16x128xf32>
    tpu.vector_store %arg20[%c1_19, %c0_20], %16 {strides = array<i32>} : memref<17x128xf32, #tpu.memory_space<vmem>>, vector<16x128xf32>,
    %c0_21 = arith.constant 0 : index
    %c0_22 = arith.constant 0 : index
    %20 = tpu.strided_load %arg20[%c0_21, %c0_22] {strides = array<i32: 2, 1>} : memref<17x128xf32, #tpu.memory_space<vmem>>, vector<8x128xf32>
    %c0_23 = arith.constant 0 : index
    %c0_24 = arith.constant 0 : index
    %21 = vector.load %arg6[%c0_23, %c0_24] : memref<8x1xf32, #tpu.memory_space<vmem>>, vector<8x1xf32>
    %22 = vector.broadcast %21 : vector<8x1xf32> to vector<8x128xf32>
    %23 = arith.mulf %20, %22 : vector<8x128xf32>
    %c1_25 = arith.constant 1 : index
    %c0_26 = arith.constant 0 : index
    %24 = tpu.strided_load %arg20[%c1_25, %c0_26] {strides = array<i32: 2, 1>} : memref<17x128xf32, #tpu.memory_space<vmem>>, vector<8x128xf32>
    %c2_27 = arith.constant 2 : index
    %c0_28 = arith.constant 0 : index
    %25 = tpu.strided_load %arg20[%c2_27, %c0_28] {strides = array<i32: 2, 1>} : memref<17x128xf32, #tpu.memory_space<vmem>>, vector<8x128xf32>
    %c0_29 = arith.constant 0 : index
    %c0_30 = arith.constant 0 : index
    %26 = vector.load %arg22[%c0_29, %c0_30] : memref<16x384xf32, #tpu.memory_space<vmem>>, vector<8x128xf32>
    tpu.vector_store %arg22[%c0_29, %c0_30], %23 {strides = array<i32>} : memref<16x384xf32, #tpu.memory_space<vmem>>, vector<8x128xf32>,
    %c0_31 = arith.constant 0 : index
    %c128 = arith.constant 128 : index
    %27 = vector.load %arg22[%c0_31, %c128] : memref<16x384xf32, #tpu.memory_space<vmem>>, vector<8x128xf32>
    tpu.vector_store %arg22[%c0_31, %c128], %24 {strides = array<i32>} : memref<16x384xf32, #tpu.memory_space<vmem>>, vector<8x128xf32>,
    %c0_32 = arith.constant 0 : index
    %c256 = arith.constant 256 : index
    %28 = vector.load %arg22[%c0_32, %c256] : memref<16x384xf32, #tpu.memory_space<vmem>>, vector<8x128xf32>
    tpu.vector_store %arg22[%c0_32, %c256], %25 {strides = array<i32>} : memref<16x384xf32, #tpu.memory_space<vmem>>, vector<8x128xf32>,
    %c0_33 = arith.constant 0 : index
    %c0_34 = arith.constant 0 : index
    %29 = vector.load %arg22[%c0_33, %c0_34] : memref<16x384xf32, #tpu.memory_space<vmem>>, vector<8x384xf32>
    %c0_35 = arith.constant 0 : index
    %c0_36 = arith.constant 0 : index
    %30 = vector.load %arg4[%c0_35, %c0_36] : memref<384x32xf32, #tpu.memory_space<vmem>>, vector<384x32xf32>
    %cst_37 = arith.constant dense<0.000000e+00> : vector<8x32xf32>
    %31 = tpu.matmul %29, %30, %cst_37 {dimension_numbers = #tpu.dot_dimension_numbers<[1], [0], [0], [1], [0, 0, 1, 1], [], []>} : vector<8x384xf32>, vector<384x32xf32>, vector<8x32xf32> -> vector<8x32xf32>
    %c0_38 = arith.constant 0 : index
    %c0_39 = arith.constant 0 : index
    %32 = vector.load %arg5[%c0_38, %c0_39] : memref<1x32xf32, #tpu.memory_space<vmem>>, vector<1x32xf32>
    %33 = vector.broadcast %32 : vector<1x32xf32> to vector<8x32xf32>
    %34 = arith.addf %31, %33 : vector<8x32xf32>
    %cst_40 = arith.constant 0.000000e+00 : f32
    %35 = vector.broadcast %cst_40 : f32 to vector<8x32xf32>
    %36 = arith.maximumf %34, %35 : vector<8x32xf32>
    %cst_41 = arith.constant 0.000000e+00 : f32
    %37 = vector.broadcast %cst_41 : f32 to vector<1x32xf32>
    %c0_42 = arith.constant 0 : index
    %c0_43 = arith.constant 0 : index
    %38 = vector.load %arg21[%c0_42, %c0_43] : memref<9x32xf32, #tpu.memory_space<vmem>>, vector<1x32xf32>
    tpu.vector_store %arg21[%c0_42, %c0_43], %37 {strides = array<i32>} : memref<9x32xf32, #tpu.memory_space<vmem>>, vector<1x32xf32>,
    %c1_44 = arith.constant 1 : index
    %c0_45 = arith.constant 0 : index
    %39 = vector.load %arg21[%c1_44, %c0_45] : memref<9x32xf32, #tpu.memory_space<vmem>>, vector<8x32xf32>
    tpu.vector_store %arg21[%c1_44, %c0_45], %36 {strides = array<i32>} : memref<9x32xf32, #tpu.memory_space<vmem>>, vector<8x32xf32>,
    %c0_46 = arith.constant 0 : index
    %c0_47 = arith.constant 0 : index
    %40 = tpu.strided_load %arg21[%c0_46, %c0_47] {strides = array<i32: 2, 1>} : memref<9x32xf32, #tpu.memory_space<vmem>>, vector<4x32xf32>
    %c0_48 = arith.constant 0 : index
    %c0_49 = arith.constant 0 : index
    %41 = vector.load %arg9[%c0_48, %c0_49] : memref<4x1xf32, #tpu.memory_space<vmem>>, vector<4x1xf32>
    %42 = vector.broadcast %41 : vector<4x1xf32> to vector<4x32xf32>
    %43 = arith.mulf %40, %42 : vector<4x32xf32>
    %c1_50 = arith.constant 1 : index
    %c0_51 = arith.constant 0 : index
    %44 = tpu.strided_load %arg21[%c1_50, %c0_51] {strides = array<i32: 2, 1>} : memref<9x32xf32, #tpu.memory_space<vmem>>, vector<4x32xf32>
    %c2_52 = arith.constant 2 : index
    %c0_53 = arith.constant 0 : index
    %45 = tpu.strided_load %arg21[%c2_52, %c0_53] {strides = array<i32: 2, 1>} : memref<9x32xf32, #tpu.memory_space<vmem>>, vector<4x32xf32>
    %c0_54 = arith.constant 0 : index
    %c0_55 = arith.constant 0 : index
    %46 = vector.load %arg22[%c0_54, %c0_55] : memref<16x384xf32, #tpu.memory_space<vmem>>, vector<4x32xf32>
    tpu.vector_store %arg22[%c0_54, %c0_55], %43 {strides = array<i32>} : memref<16x384xf32, #tpu.memory_space<vmem>>, vector<4x32xf32>,
    %c0_56 = arith.constant 0 : index
    %c32 = arith.constant 32 : index
    %47 = vector.load %arg22[%c0_56, %c32] : memref<16x384xf32, #tpu.memory_space<vmem>>, vector<4x32xf32>
    tpu.vector_store %arg22[%c0_56, %c32], %44 {strides = array<i32>} : memref<16x384xf32, #tpu.memory_space<vmem>>, vector<4x32xf32>,
    %c0_57 = arith.constant 0 : index
    %c64 = arith.constant 64 : index
    %48 = vector.load %arg22[%c0_57, %c64] : memref<16x384xf32, #tpu.memory_space<vmem>>, vector<4x32xf32>
    tpu.vector_store %arg22[%c0_57, %c64], %45 {strides = array<i32>} : memref<16x384xf32, #tpu.memory_space<vmem>>, vector<4x32xf32>,
    %c0_58 = arith.constant 0 : index
    %c0_59 = arith.constant 0 : index
    %49 = vector.load %arg22[%c0_58, %c0_59] : memref<16x384xf32, #tpu.memory_space<vmem>>, vector<4x96xf32>
    %c0_60 = arith.constant 0 : index
    %c0_61 = arith.constant 0 : index
    %50 = vector.load %arg7[%c0_60, %c0_61] : memref<96x8xf32, #tpu.memory_space<vmem>>, vector<96x8xf32>
    %cst_62 = arith.constant dense<0.000000e+00> : vector<4x8xf32>
    %51 = tpu.matmul %49, %50, %cst_62 {dimension_numbers = #tpu.dot_dimension_numbers<[1], [0], [0], [1], [0, 0, 1, 1], [], []>} : vector<4x96xf32>, vector<96x8xf32>, vector<4x8xf32> -> vector<4x8xf32>
    %c0_63 = arith.constant 0 : index
    %c0_64 = arith.constant 0 : index
    %52 = vector.load %arg8[%c0_63, %c0_64] : memref<1x8xf32, #tpu.memory_space<vmem>>, vector<1x8xf32>
    %53 = vector.broadcast %52 : vector<1x8xf32> to vector<4x8xf32>
    %54 = arith.addf %51, %53 : vector<4x8xf32>
    %cst_65 = arith.constant 0.000000e+00 : f32
    %55 = vector.broadcast %cst_65 : f32 to vector<4x8xf32>
    %56 = arith.maximumf %54, %55 : vector<4x8xf32>
    %c0_66 = arith.constant 0 : index
    %c0_67 = arith.constant 0 : index
    %57 = vector.load %arg10[%c0_66, %c0_67] : memref<8x96xf32, #tpu.memory_space<vmem>>, vector<8x96xf32>
    %cst_68 = arith.constant dense<0.000000e+00> : vector<4x96xf32>
    %58 = tpu.matmul %56, %57, %cst_68 {dimension_numbers = #tpu.dot_dimension_numbers<[1], [0], [0], [1], [0, 0, 1, 1], [], []>} : vector<4x8xf32>, vector<8x96xf32>, vector<4x96xf32> -> vector<4x96xf32>
    %59 = vector.extract_strided_slice %58 {offsets = [0, 0], sizes = [4, 32], strides = [1, 1]} : vector<4x96xf32> to vector<4x32xf32>
    %c0_69 = arith.constant 0 : index
    %c0_70 = arith.constant 0 : index
    %60 = vector.load %arg23[%c0_69, %c0_70] : memref<48x128xf32, #tpu.memory_space<vmem>>, vector<4x32xf32>
    tpu.vector_store %arg23[%c0_69, %c0_70], %59 {strides = array<i32>} : memref<48x128xf32, #tpu.memory_space<vmem>>, vector<4x32xf32>,
    %61 = vector.extract_strided_slice %58 {offsets = [0, 32], sizes = [4, 32], strides = [1, 1]} : vector<4x96xf32> to vector<4x32xf32>
    %c4 = arith.constant 4 : index
    %c0_71 = arith.constant 0 : index
    %62 = vector.load %arg23[%c4, %c0_71] : memref<48x128xf32, #tpu.memory_space<vmem>>, vector<4x32xf32>
    tpu.vector_store %arg23[%c4, %c0_71], %61 {strides = array<i32>} : memref<48x128xf32, #tpu.memory_space<vmem>>, vector<4x32xf32>,
    %63 = vector.extract_strided_slice %58 {offsets = [0, 64], sizes = [4, 32], strides = [1, 1]} : vector<4x96xf32> to vector<4x32xf32>
    %c8 = arith.constant 8 : index
    %c0_72 = arith.constant 0 : index
    %64 = vector.load %arg23[%c8, %c0_72] : memref<48x128xf32, #tpu.memory_space<vmem>>, vector<4x32xf32>
    tpu.vector_store %arg23[%c8, %c0_72], %63 {strides = array<i32>} : memref<48x128xf32, #tpu.memory_space<vmem>>, vector<4x32xf32>,
    %c0_73 = arith.constant 0 : index
    %c0_74 = arith.constant 0 : index
    %65 = vector.load %arg11[%c0_73, %c0_74] : memref<8x12xf32, #tpu.memory_space<vmem>>, vector<8x12xf32>
    %c0_75 = arith.constant 0 : index
    %c0_76 = arith.constant 0 : index
    %66 = vector.load %arg23[%c0_75, %c0_76] : memref<48x128xf32, #tpu.memory_space<vmem>>, vector<12x32xf32>
    %cst_77 = arith.constant dense<0.000000e+00> : vector<8x32xf32>
    %67 = tpu.matmul %65, %66, %cst_77 {dimension_numbers = #tpu.dot_dimension_numbers<[1], [0], [0], [1], [0, 0, 1, 1], [], []>} : vector<8x12xf32>, vector<12x32xf32>, vector<8x32xf32> -> vector<8x32xf32>
    %c0_78 = arith.constant 0 : index
    %c0_79 = arith.constant 0 : index
    %68 = vector.load %arg12[%c0_78, %c0_79] : memref<1x32xf32, #tpu.memory_space<vmem>>, vector<1x32xf32>
    %69 = vector.broadcast %68 : vector<1x32xf32> to vector<8x32xf32>
    %70 = arith.addf %67, %69 : vector<8x32xf32>
    %cst_80 = arith.constant 0.000000e+00 : f32
    %71 = vector.broadcast %cst_80 : f32 to vector<8x32xf32>
    %72 = arith.maximumf %70, %71 : vector<8x32xf32>
    %c0_81 = arith.constant 0 : index
    %c0_82 = arith.constant 0 : index
    %73 = vector.load %arg13[%c0_81, %c0_82] : memref<32x384xf32, #tpu.memory_space<vmem>>, vector<32x384xf32>
    %cst_83 = arith.constant dense<0.000000e+00> : vector<8x384xf32>
    %74 = tpu.matmul %72, %73, %cst_83 {dimension_numbers = #tpu.dot_dimension_numbers<[1], [0], [0], [1], [0, 0, 1, 1], [], []>} : vector<8x32xf32>, vector<32x384xf32>, vector<8x384xf32> -> vector<8x384xf32>
    %75 = vector.extract_strided_slice %74 {offsets = [0, 0], sizes = [8, 128], strides = [1, 1]} : vector<8x384xf32> to vector<8x128xf32>
    %c0_84 = arith.constant 0 : index
    %c0_85 = arith.constant 0 : index
    %76 = vector.load %arg23[%c0_84, %c0_85] : memref<48x128xf32, #tpu.memory_space<vmem>>, vector<8x128xf32>
    tpu.vector_store %arg23[%c0_84, %c0_85], %75 {strides = array<i32>} : memref<48x128xf32, #tpu.memory_space<vmem>>, vector<8x128xf32>,
    %77 = vector.extract_strided_slice %74 {offsets = [0, 128], sizes = [8, 128], strides = [1, 1]} : vector<8x384xf32> to vector<8x128xf32>
    %c8_86 = arith.constant 8 : index
    %c0_87 = arith.constant 0 : index
    %78 = vector.load %arg23[%c8_86, %c0_87] : memref<48x128xf32, #tpu.memory_space<vmem>>, vector<8x128xf32>
    tpu.vector_store %arg23[%c8_86, %c0_87], %77 {strides = array<i32>} : memref<48x128xf32, #tpu.memory_space<vmem>>, vector<8x128xf32>,
    %79 = vector.extract_strided_slice %74 {offsets = [0, 256], sizes = [8, 128], strides = [1, 1]} : vector<8x384xf32> to vector<8x128xf32>
    %c16 = arith.constant 16 : index
    %c0_88 = arith.constant 0 : index
    %80 = vector.load %arg23[%c16, %c0_88] : memref<48x128xf32, #tpu.memory_space<vmem>>, vector<8x128xf32>
    tpu.vector_store %arg23[%c16, %c0_88], %79 {strides = array<i32>} : memref<48x128xf32, #tpu.memory_space<vmem>>, vector<8x128xf32>,
    %c0_89 = arith.constant 0 : index
    %c0_90 = arith.constant 0 : index
    %81 = vector.load %arg14[%c0_89, %c0_90] : memref<16x24xf32, #tpu.memory_space<vmem>>, vector<16x24xf32>
    %c0_91 = arith.constant 0 : index
    %c0_92 = arith.constant 0 : index
    %82 = vector.load %arg23[%c0_91, %c0_92] : memref<48x128xf32, #tpu.memory_space<vmem>>, vector<24x128xf32>
    %cst_93 = arith.constant dense<0.000000e+00> : vector<16x128xf32>
    %83 = tpu.matmul %81, %82, %cst_93 {dimension_numbers = #tpu.dot_dimension_numbers<[1], [0], [0], [1], [0, 0, 1, 1], [], []>} : vector<16x24xf32>, vector<24x128xf32>, vector<16x128xf32> -> vector<16x128xf32>
    %c0_94 = arith.constant 0 : index
    %c0_95 = arith.constant 0 : index
    %84 = vector.load %arg15[%c0_94, %c0_95] : memref<1x128xf32, #tpu.memory_space<vmem>>, vector<1x128xf32>
    %85 = vector.broadcast %84 : vector<1x128xf32> to vector<16x128xf32>
    %86 = arith.addf %83, %85 : vector<16x128xf32>
    %cst_96 = arith.constant 0.000000e+00 : f32
    %87 = vector.broadcast %cst_96 : f32 to vector<16x128xf32>
    %88 = arith.maximumf %86, %87 : vector<16x128xf32>
    %c0_97 = arith.constant 0 : index
    %c0_98 = arith.constant 0 : index
    %89 = vector.load %arg16[%c0_97, %c0_98] : memref<128x384xf32, #tpu.memory_space<vmem>>, vector<128x384xf32>
    %cst_99 = arith.constant dense<0.000000e+00> : vector<16x384xf32>
    %90 = tpu.matmul %88, %89, %cst_99 {dimension_numbers = #tpu.dot_dimension_numbers<[1], [0], [0], [1], [0, 0, 1, 1], [], []>} : vector<16x128xf32>, vector<128x384xf32>, vector<16x384xf32> -> vector<16x384xf32>
    %91 = vector.extract_strided_slice %90 {offsets = [0, 0], sizes = [16, 128], strides = [1, 1]} : vector<16x384xf32> to vector<16x128xf32>
    %c0_100 = arith.constant 0 : index
    %c0_101 = arith.constant 0 : index
    %92 = vector.load %arg23[%c0_100, %c0_101] : memref<48x128xf32, #tpu.memory_space<vmem>>, vector<16x128xf32>
    tpu.vector_store %arg23[%c0_100, %c0_101], %91 {strides = array<i32>} : memref<48x128xf32, #tpu.memory_space<vmem>>, vector<16x128xf32>,
    %93 = vector.extract_strided_slice %90 {offsets = [0, 128], sizes = [16, 128], strides = [1, 1]} : vector<16x384xf32> to vector<16x128xf32>
    %c16_102 = arith.constant 16 : index
    %c0_103 = arith.constant 0 : index
    %94 = vector.load %arg23[%c16_102, %c0_103] : memref<48x128xf32, #tpu.memory_space<vmem>>, vector<16x128xf32>
    tpu.vector_store %arg23[%c16_102, %c0_103], %93 {strides = array<i32>} : memref<48x128xf32, #tpu.memory_space<vmem>>, vector<16x128xf32>,
    %95 = vector.extract_strided_slice %90 {offsets = [0, 256], sizes = [16, 128], strides = [1, 1]} : vector<16x384xf32> to vector<16x128xf32>
    %c32_104 = arith.constant 32 : index
    %c0_105 = arith.constant 0 : index
    %96 = vector.load %arg23[%c32_104, %c0_105] : memref<48x128xf32, #tpu.memory_space<vmem>>, vector<16x128xf32>
    tpu.vector_store %arg23[%c32_104, %c0_105], %95 {strides = array<i32>} : memref<48x128xf32, #tpu.memory_space<vmem>>, vector<16x128xf32>,
    %c0_106 = arith.constant 0 : index
    %c0_107 = arith.constant 0 : index
    %97 = vector.load %arg17[%c0_106, %c0_107] : memref<32x48xf32, #tpu.memory_space<vmem>>, vector<32x48xf32>
    %c0_108 = arith.constant 0 : index
    %c0_109 = arith.constant 0 : index
    %98 = vector.load %arg23[%c0_108, %c0_109] : memref<48x128xf32, #tpu.memory_space<vmem>>, vector<48x128xf32>
    %cst_110 = arith.constant dense<0.000000e+00> : vector<32x128xf32>
    %99 = tpu.matmul %97, %98, %cst_110 {dimension_numbers = #tpu.dot_dimension_numbers<[1], [0], [0], [1], [0, 0, 1, 1], [], []>} : vector<32x48xf32>, vector<48x128xf32>, vector<32x128xf32> -> vector<32x128xf32>
    %c0_111 = arith.constant 0 : index
    %c0_112 = arith.constant 0 : index
    %100 = vector.load %arg18[%c0_111, %c0_112] : memref<1x128xf32, #tpu.memory_space<vmem>>, vector<1x128xf32>
    %101 = vector.broadcast %100 : vector<1x128xf32> to vector<32x128xf32>
    %102 = arith.addf %99, %101 : vector<32x128xf32>
    %103 = arith.negf %102 : vector<32x128xf32>
    %104 = math.exp %103 : vector<32x128xf32>
    %cst_113 = arith.constant 1.000000e+00 : f32
    %105 = vector.broadcast %cst_113 : f32 to vector<32x128xf32>
    %106 = arith.addf %105, %104 : vector<32x128xf32>
    %107 = arith.divf %105, %106 : vector<32x128xf32>
    %c0_114 = arith.constant 0 : index
    %c0_115 = arith.constant 0 : index
    %108 = vector.load %arg19[%c0_114, %c0_115] : memref<32x128xf32, #tpu.memory_space<vmem>>, vector<32x128xf32>
    tpu.vector_store %arg19[%c0_114, %c0_115], %107 {strides = array<i32>} : memref<32x128xf32, #tpu.memory_space<vmem>>, vector<32x128xf32>,
    return
  }
}

</mosaic_0001>

<bundles_post_ra>
// kernel: autoencoder_forward.1
= control target key start
LH: loop header
LB: loop body
LE: loop exit
PB: predicated region body
PF: predicated region fallthrough
CT: control target
= control target key end

     0   :  { %v1860_v0 = vmov 0   ;;  %v1861_v2 = vmov 0.0|0.0   ;;  %s1862_s24 = smov 48   ;;  %s1863_s25 = smov 96   ;;  %vm111_vm0 = vcmask 130048   ;;  %vm87_vm1 = vcmask 392192   ;;  %s2533_s3 = inlined_call_operand.vmem [shape: f32[16,1], index: 3, kind: input, shape index: {}]   ;;  %s2534_s1 = inlined_call_operand.vmem [shape: f32[144,128], index: 1, kind: input, shape index: {}]   ;;  %s2535_s0 = inlined_call_operand.vmem [shape: f32[33,48], index: 0, kind: input, shape index: {}]   ;;  %s2536_s6 = inlined_call_operand.vmem [shape: f32[8,1], index: 6, kind: input, shape index: {}]   ;;  %s2537_s4 = inlined_call_operand.vmem [shape: f32[384,32], index: 4, kind: input, shape index: {}]   ;;  %s2538_s9 = inlined_call_operand.vmem [shape: f32[4,1], index: 9, kind: input, shape index: {}]   ;;  %s2539_s2 = inlined_call_operand.vmem [shape: f32[1,128], index: 2, kind: input, shape index: {}]   ;;  %s2540_s7 = inlined_call_operand.vmem [shape: f32[96,8], index: 7, kind: input, shape index: {}]   ;;  %s2541_s5 = inlined_call_operand.vmem [shape: f32[1,32], index: 5, kind: input, shape index: {}]   ;;  %s2542_s10 = inlined_call_operand.vmem [shape: f32[8,96], index: 10, kind: input, shape index: {}]   ;;  %s2543_s8 = inlined_call_operand.vmem [shape: f32[1,8], index: 8, kind: input, shape index: {}]   ;;  %s2544_s13 = inlined_call_operand.vmem [shape: f32[32,384], index: 13, kind: input, shape index: {}]   ;;  %s2545_s11 = inlined_call_operand.vmem [shape: f32[8,12], index: 11, kind: input, shape index: {}]   ;;  %s2546_s12 = inlined_call_operand.vmem [shape: f32[1,32], index: 12, kind: input, shape index: {}]   ;;  %s2547_s14 = inlined_call_operand.vmem [shape: f32[16,24], index: 14, kind: input, shape index: {}]   ;;  %s2548_s16 = inlined_call_operand.vmem [shape: f32[128,384], index: 16, kind: input, shape index: {}]   ;;  %s2549_s15 = inlined_call_operand.vmem [shape: f32[1,128], index: 15, kind: input, shape index: {}]   ;;  %s2550_s17 = inlined_call_operand.vmem [shape: f32[32,48], index: 17, kind: input, shape index: {}]   ;;  %s2551_s18 = inlined_call_operand.vmem [shape: f32[1,128], index: 18, kind: input, shape index: {}]   ;;  %s2552_s19 = inlined_call_operand.vmem [shape: f32[32,128], index: 19, kind: output, shape index: {}]  }
   0x1   :  { %2556 = sst [smem:[#allocation6_spill]] %s2533_s3  ;;  %1842 = vset.pattern.permute.xlu0 %v1860_v0  ;;  %1634 = vmatprep.subr.bf16.mxu0 %v1861_v2  ;;  %v264_v26 = vld [vmem:[%s2537_s4 + $0x80] sm:$0xff]  ;;  %v265_v27 = vld [vmem:[%s2537_s4 + $0x88] sm:$0xff]  ;;  %v266_v31 = vld [vmem:[%s2537_s4 + $0x90] sm:$0xff]  ;;  %vm98_vm2 = vcmask 785792   ;;  %vm109_vm3 = vcmask 1048320  }
   0x2   :  { %2557 = sst [smem:[#allocation7_spill]] %s2534_s1  ;;  %s2560_s20 = sld [smem:[#allocation6_spill]]  ;;  %1843 = vset.pattern.permute.xlu1 %v1860_v0  ;;  %v248_v28 = vld [vmem:[%s2537_s4] sm:$0xff]  ;;  %v1661_v29 = vpack.c.bf16 %v265_v27, %v264_v26  ;;  %v249_v30 = vld [vmem:[%s2537_s4 + $0x8] sm:$0xff]  ;;  %v267_v32 = vld [vmem:[%s2537_s4 + $0x98] sm:$0xff]  ;;  %vm1865_vm4 = vmmov 0  }
   0x3   :  { %2558 = sst [smem:[#allocation8_spill]] %s2535_s0  ;;  %s2562_s26 = sld [smem:[#allocation7_spill]]  ;;  %v1663_v34 = vpack.c.bf16 %v249_v30, %v248_v28  ;;  %v1665_v35 = vpack.c.bf16 %v267_v32, %v266_v31  ;;  %v250_v59 = vld [vmem:[%s2537_s4 + $0x10] sm:$0xff]  ;;  %v251_v60 = vld [vmem:[%s2537_s4 + $0x18] sm:$0xff]  ;;  %v268_v62 = vld [vmem:[%s2537_s4 + $0xa0] sm:$0xff]  ;;  %vm444_vm5 = vcmask 253952  }
   0x4   :  { %2559 = sst [smem:[#allocation9_spill]] %s2536_s6  ;;  %s2561_s22 = sld [smem:[#allocation8_spill]]  ;;  %1662 = vmatprep.subr.bf16.mxu1 %v1661_v29  ;;  %v1667_v61 = vpack.c.bf16 %v251_v60, %v250_v59  ;;  %v269_v63 = vld [vmem:[%s2537_s4 + $0xa8] sm:$0xff]  ;;  %v260_v27 = vld [vmem:[%s2537_s4 + $0x60] sm:$0xff]  ;;  %v278_v30 = vld [vmem:[%s2537_s4 + $0xf0] sm:$0xff]  ;;  %vm446_vm6 = vcmask 261120  }
   0x5   :  { %s2563_s1 = sld [smem:[#allocation9_spill]]  ;;  %1664 = vmatpush3.bf16.msra.mxu1 %v1663_v34  ;;  %v1669_v0 = vpack.c.bf16 %v269_v63, %v268_v62  ;;  %v261_v28 = vld [vmem:[%s2537_s4 + $0x68] sm:$0xff]  ;;  %v279_v31 = vld [vmem:[%s2537_s4 + $0xf8] sm:$0xff]  ;;  %v286_v60 = vld [vmem:[%s2537_s4 + $0x130] sm:$0xff]  ;;  %vm460_vm7 = vcmask 257024   ;;  %s1866_s3 = smov 64  }
   0x6   :  { %1666 = vmatprep.subr.bf16.mxu1 %v1665_v35  ;;  %v1687_v29 = vpack.c.bf16 %v261_v28, %v260_v27  ;;  %v1689_v32 = vpack.c.bf16 %v279_v31, %v278_v30  ;;  %v263_v34 = vld [vmem:[%s2537_s4 + $0x78] sm:$0xff]  ;;  %v288_v63 = vld [vmem:[%s2537_s4 + $0x140] sm:$0xff]  ;;  %vm466_vm8 = vcmask 519424   ;;  %vm472_vm9 = vcmask 781824  }
   0x7   :  { %v1358_v28 = vld [vmem:[%s2541_s5] ss:$0 sm:$0xff]  ;;  %vm494_vm10 = vcmask 785408   ;;  %vm570_vm11 = vcmask 64512   ;;  %vm668_vm12 = vcmask 1043456   ;;  %vm1868_vm13 = vmmov 1  }
   0x8   :  { %v65_v1 = vld [vmem:[%s2560_s20] sm:$0xff]  ;;  %v66_v4 = vld [vmem:[%s2560_s20 + $0x8] sm:$0xff]  ;;  %vm1737_vm14 = vmpackc.low %vm668_vm12, %vm1868_vm13  ;;  %vm664_vm15 = vcmask 97280  }
   0x9   :  { %69 = vperm.xlu0 %1842, %v65_v1   ;;  %v119_v5 = vld [vmem:[%s2562_s26] sm:$0xff]  ;;  %v120_v6 = vld [vmem:[%s2562_s26 + $0x8] sm:$0xff]  ;;  %v121_v9 = vld [vmem:[%s2562_s26 + $0x10] sm:$0xff]  ;;  %1668 = vmatpush3.bf16.msra.mxu1 %v1667_v61 }
   0xa   :  { %v1351_v3 = vld [vmem:[%s2561_s22 + $0x1] ss:$2 sm:$0xff]  ;;  %v1353_v7 = vld [vmem:[%s2561_s22 + $0x2] ss:$2 sm:$0xff]  ;;  %v1635_v8 = vpack.c.bf16 %v120_v6, %v119_v5  ;;  %v122_v10 = vld [vmem:[%s2562_s26 + $0x18] sm:$0xff]  ;;  %1670 = vmatprep.subr.bf16.mxu1 %v1669_v0 }
   0xb   :  { %92 = vrot.lane.b32.xlu1 %v1351_v3, %s1862_s24  ;;  %v1638_v11 = vpack.c.bf16 %v122_v10, %v121_v9  ;;  %v1352_v12 = vld [vmem:[%s2561_s22 + $0x11] ss:$2 sm:$0xff]  ;;  %v123_v13 = vld [vmem:[%s2562_s26 + $0x20] sm:$0xff]  ;;  %v124_v14 = vld [vmem:[%s2562_s26 + $0x28] sm:$0xff] }
   0xc   :  { %1636 = vmatpush1.bf16.msra.mxu0 %v1635_v8  ;;  %v1354_v15 = vld [vmem:[%s2561_s22 + $0x12] ss:$2 sm:$0xff]  ;;  %v1641_v16 = vpack.c.bf16 %v124_v14, %v123_v13  ;;  %v128_v22 = vld [vmem:[%s2562_s26 + $0x48] sm:$0xff] }
   0xd   :  { %74 = vperm.xlu0 %1842, %v66_v4   ;;  %1637 = vmatprep.subr.bf16.mxu0 %v1861_v2  ;;  %v231_v17 = vld [vmem:[%s2563_s1] sm:$0xff]  ;;  %v125_v18 = vld [vmem:[%s2562_s26 + $0x30] sm:$0xff]  ;;  %v126_v19 = vld [vmem:[%s2562_s26 + $0x38] sm:$0xff] }
   0xe   :  { %v1644_v20 = vpack.c.bf16 %v126_v19, %v125_v18  ;;  %v127_v21 = vld [vmem:[%s2562_s26 + $0x40] sm:$0xff]  ;;  %v129_v24 = vld [vmem:[%s2562_s26 + $0x50] sm:$0xff]  ;;  %v130_v25 = vld [vmem:[%s2562_s26 + $0x58] sm:$0xff] }
   0xf   :  { %103 = vrot.lane.b32.xlu1 %v1353_v7, %s1863_s25  ;;  %v1647_v23 = vpack.c.bf16 %v128_v22, %v127_v21  ;;  %v1650_v33 = vpack.c.bf16 %v130_v25, %v129_v24  ;;  %v131_v36 = vld [vmem:[%s2562_s26 + $0x60] sm:$0xff]  ;;  %v132_v37 = vld [vmem:[%s2562_s26 + $0x68] sm:$0xff]  ;;  %v133_v39 = vld [vmem:[%s2562_s26 + $0x70] sm:$0xff]  ;;  %v1864_v25 = vmov 0.0  }
  0x10   :  { %1639 = vmatpush1.bf16.msra.mxu0 %v1638_v11  ;;  %v1653_v38 = vpack.c.bf16 %v132_v37, %v131_v36  ;;  %v134_v40 = vld [vmem:[%s2562_s26 + $0x78] sm:$0xff]  ;;  %v135_v42 = vld [vmem:[%s2562_s26 + $0x80] sm:$0xff]  ;;  %v136_v43 = vld [vmem:[%s2562_s26 + $0x88] sm:$0xff]  ;;  %227 = vst [vmem:[#allocation2] sm:$0x1] %v1864_v25 }
  0x11   :  { %94 = vrot.lane.b32.xlu0 %v1352_v12, %s1862_s24  ;;  %1640 = vmatprep.subr.bf16.mxu0 %v1861_v2  ;;  %v1656_v41 = vpack.c.bf16 %v134_v40, %v133_v39  ;;  %v1659_v44 = vpack.c.bf16 %v136_v43, %v135_v42  ;;  %v62_v48 = vld [vmem:[%s2561_s22] ss:$2 sm:$0xff]  ;;  %v1350_v52 = vld [vmem:[%s2561_s22 + $0x10] ss:$2 sm:$0xff]  ;;  %445 = vst.msk [vmem:[#allocation3] sm:$0x1] %vm444_vm5, %v1864_v25 }
  0x12   :  { %v252_v1 = vld [vmem:[%s2537_s4 + $0x20] sm:$0xff]  ;;  %v253_v3 = vld [vmem:[%s2537_s4 + $0x28] sm:$0xff]  ;;  %v270_v5 = vld [vmem:[%s2537_s4 + $0xb0] sm:$0xff] }
  0x13   :  { %105 = vrot.lane.b32.xlu1 %v1354_v15, %s1863_s25  ;;  %v1671_v4 = vpack.c.bf16 %v253_v3, %v252_v1  ;;  %v271_v6 = vld [vmem:[%s2537_s4 + $0xb8] sm:$0xff]  ;;  %v254_v8 = vld [vmem:[%s2537_s4 + $0x30] sm:$0xff]  ;;  %v272_v11 = vld [vmem:[%s2537_s4 + $0xc0] sm:$0xff] }
  0x14   :  { %1642 = vmatpush1.bf16.msra.mxu0 %v1641_v16  ;;  %v1673_v7 = vpack.c.bf16 %v271_v6, %v270_v5  ;;  %v255_v9 = vld [vmem:[%s2537_s4 + $0x38] sm:$0xff]  ;;  %v273_v12 = vld [vmem:[%s2537_s4 + $0xc8] sm:$0xff]  ;;  %v256_v14 = vld [vmem:[%s2537_s4 + $0x40] sm:$0xff] }
  0x15   :  { %234 = vperm.xlu0 %1842, %v231_v17   ;;  %1643 = vmatprep.subr.bf16.mxu0 %v1861_v2  ;;  %v1675_v10 = vpack.c.bf16 %v255_v9, %v254_v8  ;;  %v1677_v13 = vpack.c.bf16 %v273_v12, %v272_v11  ;;  %v257_v15 = vld [vmem:[%s2537_s4 + $0x48] sm:$0xff]  ;;  %v274_v17 = vld [vmem:[%s2537_s4 + $0xd0] sm:$0xff]  ;;  %v275_v18 = vld [vmem:[%s2537_s4 + $0xd8] sm:$0xff] }
  0x16   :  { %1672 = vmatpush3.bf16.msra.mxu1 %v1671_v4  ;;  %v1679_v16 = vpack.c.bf16 %v257_v15, %v256_v14  ;;  %v1681_v19 = vpack.c.bf16 %v275_v18, %v274_v17  ;;  %v259_v21 = vld [vmem:[%s2537_s4 + $0x58] sm:$0xff]  ;;  %v277_v24 = vld [vmem:[%s2537_s4 + $0xe8] sm:$0xff]  ;;  %v449_v36 = vld [vmem:[%s2538_s9] sm:$0xf] }
  0x17   :  { %1674 = vmatprep.subr.bf16.mxu1 %v1673_v7  ;;  %452 = vperm.xlu1 %1843, %v449_v36   ;;  %v1355_v37 = vld [vmem:[%s2539_s2] ss:$0 sm:$0xff]  ;;  %v287_v61 = vld [vmem:[%s2537_s4 + $0x138] sm:$0xff]  ;;  %v289_v0 = vld [vmem:[%s2537_s4 + $0x148] sm:$0xff] }
  0x18   :  { %1645 = vmatpush1.bf16.msra.mxu0 %v1644_v20  ;;  %v258_v20 = vld [vmem:[%s2537_s4 + $0x50] sm:$0xff]  ;;  %v1703_v62 = vpack.c.bf16 %v287_v61, %v286_v60  ;;  %v1706_v1 = vpack.c.bf16 %v289_v0, %v288_v63  ;;  %v291_v4 = vld [vmem:[%s2537_s4 + $0x158] sm:$0xff]  ;;  %v292_v6 = vld [vmem:[%s2537_s4 + $0x160] sm:$0xff] }
  0x19   :  { %1646 = vmatprep.subr.bf16.mxu0 %v1861_v2  ;;  %v1683_v22 = vpack.c.bf16 %v259_v21, %v258_v20  ;;  %v290_v3 = vld [vmem:[%s2537_s4 + $0x150] sm:$0xff]  ;;  %v293_v7 = vld [vmem:[%s2537_s4 + $0x168] sm:$0xff]  ;;  %v475_v12 = vld [vmem:[%s2540_s7] sm:$0xff] }
  0x1a   :  { %1676 = vmatpush3.bf16.msra.mxu1 %v1675_v10  ;;  %v1709_v5 = vpack.c.bf16 %v291_v4, %v290_v3  ;;  %v1712_v8 = vpack.c.bf16 %v293_v7, %v292_v6  ;;  %v294_v9 = vld [vmem:[%s2537_s4 + $0x170] sm:$0xff]  ;;  %v295_v10 = vld [vmem:[%s2537_s4 + $0x178] sm:$0xff]  ;;  %v479_v18 = vld [vmem:[%s2540_s7 + $0x20] sm:$0xff] }
  0x1b   :  { %1678 = vmatprep.subr.bf16.mxu1 %v1677_v13  ;;  %v1715_v11 = vpack.c.bf16 %v295_v10, %v294_v9  ;;  %v476_v13 = vld [vmem:[%s2540_s7 + $0x8] sm:$0xff]  ;;  %v477_v14 = vld [vmem:[%s2540_s7 + $0x10] sm:$0xff]  ;;  %v483_v31 = vld [vmem:[%s2540_s7 + $0x40] sm:$0xff] }
  0x1c   :  { %1648 = vmatpush1.bf16.msra.mxu0 %v1647_v23  ;;  %v276_v23 = vld [vmem:[%s2537_s4 + $0xe0] sm:$0xff]  ;;  %v1718_v15 = vpack.c.bf16 %v476_v13, %v475_v12  ;;  %v481_v21 = vld [vmem:[%s2540_s7 + $0x30] sm:$0xff]  ;;  %v746_v60 = vld [vmem:[%s2544_s13 + $0x18] sm:$0xff] }
  0x1d   :  { %1649 = vmatprep.subr.bf16.mxu0 %v1861_v2  ;;  %v1685_v26 = vpack.c.bf16 %v277_v24, %v276_v23  ;;  %v485_v36 = vld [vmem:[%s2540_s7 + $0x50] sm:$0xff]  ;;  %v654_v4 = vld [vmem:[%s2545_s11] sm:$0xff]  ;;  %v752_v9 = vld [vmem:[%s2544_s13 + $0x48] sm:$0xff] }
  0x1e   :  { %1680 = vmatpush3.bf16.msra.mxu1 %v1679_v16  ;;  %v478_v16 = vld [vmem:[%s2540_s7 + $0x18] sm:$0xff]  ;;  %v753_v6 = vld [vmem:[%s2544_s13 + $0x50] sm:$0xff]  ;;  %v748_v13 = vld [vmem:[%s2544_s13 + $0x28] sm:$0xff] }
  0x1f   :  { %1682 = vmatprep.subr.bf16.mxu1 %v1681_v19  ;;  %v1721_v17 = vpack.c.bf16 %v478_v16, %v477_v14  ;;  %v480_v19 = vld [vmem:[%s2540_s7 + $0x28] sm:$0xff]  ;;  %v745_v12 = vld [vmem:[%s2544_s13 + $0x10] sm:$0xff] }
  0x20   :  { %1651 = vmatpush1.bf16.msra.mxu0 %v1650_v33  ;;  %v262_v33 = vld [vmem:[%s2537_s4 + $0x70] sm:$0xff]  ;;  %v1724_v20 = vpack.c.bf16 %v480_v19, %v479_v18  ;;  %v751_v19 = vld [vmem:[%s2544_s13 + $0x40] sm:$0xff] }
  0x21   :  { %1652 = vmatprep.subr.bf16.mxu0 %v1861_v2  ;;  %v1691_v35 = vpack.c.bf16 %v263_v34, %v262_v33 }
  0x22   :  { %1684 = vmatpush3.bf16.msra.mxu1 %v1683_v22  ;;  %v482_v22 = vld [vmem:[%s2540_s7 + $0x38] sm:$0xff] }
  0x23   :  { %1686 = vmatprep.subr.bf16.mxu1 %v1685_v26  ;;  %v1727_v23 = vpack.c.bf16 %v482_v22, %v481_v21  ;;  %v902_v22 = vld [vmem:[%s2547_s14] sm:$0xff] }
  0x24   :  { %1654 = vmatpush1.bf16.msra.mxu0 %v1653_v38 }
  0x25   :  { %1655 = vmatprep.subr.bf16.mxu0 %v1861_v2 }
  0x26   :  { %1688 = vmatpush3.bf16.msra.mxu1 %v1687_v29 }
  0x27   :  { %1690 = vmatprep.subr.bf16.mxu1 %v1689_v32  ;;  %v484_v32 = vld [vmem:[%s2540_s7 + $0x48] sm:$0xff] }
  0x28   :  { %1657 = vmatpush1.bf16.msra.mxu0 %v1656_v41 }
  0x29   :  { %1658 = vmatprep.subr.bf16.mxu0 %v1861_v2 }
  0x2a   :  { %1692 = vmatpush3.bf16.msra.mxu1 %v1691_v35  ;;  %v1730_v35 = vpack.c.bf16 %v484_v32, %v483_v31  ;;  %v1004_v31 = vld [vmem:[%s2548_s16 + $0x30] sm:$0xff] }
  0x2b   :  { %1693 = vmatprep.subr.bf16.mxu1 %v1861_v2 }
  0x2c   :  { %1660 = vmatpush1.bf16.msra.mxu0 %v1659_v44 }
  0x2d   :  { %1717 = vmatprep.subr.bf16.mxu0 %v1861_v2 }
  0x7d   :  { %v93_v45 = vpop.permute.xlu1 %92 }
  0x81   :  { %v104_v46 = vpop.permute.xlu1 %103 }
  0x82   :  { %112 = vst.msk [vmem:[#allocation4 + $0x8] sm:$0xff] %vm111_vm0, %v104_v46 }
  0x85   :  { %v106_v47 = vpop.permute.xlu1 %105 }
  0x86   :  { %114 = vst.msk [vmem:[#allocation4 + $0x20] sm:$0xff] %vm111_vm0, %v106_v47 }
  0x88   :  { %v70_v49 = vpop.permute.xlu0 %69 }
  0x89   :  { %v116_v50 = vld [vmem:[#allocation4 + $0x8] sm:$0xff]  ;;  %v77_v51 = vmul.f32 %v70_v49, %v62_v48 }
  0x8a   :  { %1356 = vmatprep.mubr.msk.f32.mxu0 %vm111_vm0, %v116_v50 }
  0x8b   :  { %88 = vst.msk [vmem:[#allocation4] sm:$0xff] %vm87_vm1, %v77_v51 }
  0x8c   :  { %99 = vst.msk [vmem:[#allocation4] sm:$0xff] %vm98_vm2, %v93_v45  ;;  %v75_v53 = vpop.permute.xlu0 %74 }
  0x8d   :  { %110 = vst.msk [vmem:[#allocation4] sm:$0xff] %vm109_vm3, %v104_v46  ;;  %v78_v54 = vmul.f32 %v1350_v52, %v75_v53  ;;  %v118_v56 = vld [vmem:[#allocation4 + $0x20] sm:$0xff]  ;;  %v280_v46 = vld [vmem:[%s2537_s4 + $0x100] sm:$0xff] }
  0x8f   :  { %89 = vst.msk [vmem:[#allocation4 + $0x18] sm:$0xff] %vm87_vm1, %v78_v54  ;;  %v282_v54 = vld [vmem:[%s2537_s4 + $0x110] sm:$0xff] }
  0x90   :  { %v95_v55 = vpop.permute.xlu0 %94 }
  0x91   :  { %100 = vst.msk [vmem:[#allocation4 + $0x18] sm:$0xff] %vm98_vm2, %v95_v55  ;;  %v283_v55 = vld [vmem:[%s2537_s4 + $0x118] sm:$0xff] }
  0x92   :  { %113 = vst.msk [vmem:[#allocation4 + $0x18] sm:$0xff] %vm109_vm3, %v106_v47  ;;  %v281_v47 = vld [vmem:[%s2537_s4 + $0x108] sm:$0xff] }
  0x93   :  { %v1694_v52 = vpack.c.bf16 %v281_v47, %v280_v46 }
  0x94   :  { %v115_v57 = vld [vmem:[#allocation4] sm:$0xff]  ;;  %v235_v48 = vpop.permute.xlu0 %234 }
  0x95   :  { %215 = vmatmul.mubr.f32.vlgmr.msra.gmra.mrb[0].mxu0 %v115_v57  ;;  %v284_v57 = vld [vmem:[%s2537_s4 + $0x120] sm:$0xff] }
  0x96   :  { %1357 = vmatprep.mubr.msk.f32.mxu0 %vm111_vm0, %v118_v56  ;;  %v1697_v56 = vpack.c.bf16 %v283_v55, %v282_v54  ;;  %1719 = vmatpush3.bf16.msra.mxu0 %v1718_v15  ;;  %vm914_vm0 = vcmask 195584  }
  0x97   :  { %1720 = vmatprep.subr.bf16.mxu0 %v1861_v2 }
  0x99   :  { %v117_v58 = vld [vmem:[#allocation4 + $0x18] sm:$0xff] }
  0x9a   :  { %220 = vmatmul.mubr.f32.gmra.mrb[2].mxu0 %v117_v58  ;;  %v285_v58 = vld [vmem:[%s2537_s4 + $0x128] sm:$0xff] }
  0x9b   :  { %1546 = vmatprep.mubr.msk.f32.mxu0 %vm1865_vm4, %v1864_v25  ;;  %v1700_v59 = vpack.c.bf16 %v285_v58, %v284_v57  ;;  %1722 = vmatpush3.bf16.msra.mxu0 %v1721_v17  ;;  %v747_v57 = vld [vmem:[%s2544_s13 + $0x20] sm:$0xff]  ;;  %v1748_v17 = vpack.c.bf16 %v748_v13, %v745_v12 }
  0x9c   :  { %1723 = vmatprep.subr.bf16.mxu0 %v1861_v2  ;;  %v743_v58 = vld [vmem:[%s2544_s13] sm:$0xff] }
  0x9d   :  { %v1741_v61 = vpack.c.bf16 %v746_v60, %v743_v58  ;;  %v1038_v60 = vld [vmem:[%s2548_s16 + $0x140] sm:$0xff] }
  0x9f   :  { %1725 = vmatpush3.bf16.msra.mxu0 %v1724_v20  ;;  %v754_v20 = vld [vmem:[%s2544_s13 + $0x58] sm:$0xff] }
  0xa0   :  { %1726 = vmatprep.subr.bf16.mxu0 %v1861_v2  ;;  %v1751_v21 = vpack.c.bf16 %v754_v20, %v751_v19  ;;  %v1024_v20 = vld [vmem:[%s2548_s16 + $0xd0] sm:$0xff] }
  0xa3   :  { %1728 = vmatpush3.bf16.msra.mxu0 %v1727_v23  ;;  %v999_v23 = vld [vmem:[%s2548_s16 + $0x8] sm:$0xff] }
  0xa4   :  { %1729 = vmatprep.subr.bf16.mxu0 %v1861_v2 }
  0xa7   :  { %1731 = vmatpush3.bf16.msra.mxu0 %v1730_v35  ;;  %v1011_v35 = vld [vmem:[%s2548_s16 + $0x68] sm:$0xff] }
  0xa8   :  { %1732 = vmatprep.subr.bf16.mxu0 %v1861_v2 }
 0x168   :  { %v216_v38 = vpop.f32.mrb[0].mxu0 }
 0x169   :  { %v217_v39 = vadd.f32 %v1355_v37, %v216_v38  ;;  %v218_v40 = vpop.f32.mrb[1].mxu0 }
 0x16a   :  { %v453_v40 = vpop.permute.xlu1 %452 }
 0x16b   :  { %v225_v41 = vmax.f32 %v217_v39, 0.0 }
 0x16d   :  { %228 = vst [vmem:[#allocation2 + $0x1] sm:$0xff] %v225_v41  ;;  %v221_v42 = vpop.f32.mrb[2].mxu0 }
 0x16e   :  { %v222_v43 = vadd.f32 %v1355_v37, %v221_v42  ;;  %v223_v44 = vpop.f32.mrb[3].mxu0  ;;  %v486_v37 = vld [vmem:[%s2540_s7 + $0x58] sm:$0xff]  ;;  %s1867_s7 = smov 32  }
 0x16f   :  { %v1733_v39 = vpack.c.bf16 %v486_v37, %v485_v36  ;;  %v1014_v36 = vld [vmem:[%s2548_s16 + $0x80] sm:$0xff] }
 0x170   :  { %v226_v45 = vmax.f32 %v222_v43, 0.0  ;;  %v1765_v37 = vpack.c.bf16 %v1014_v36, %v1011_v35  ;;  %v1042_v35 = vld [vmem:[%s2548_s16 + $0x160] sm:$0xff]  ;;  %v1045_v36 = vld [vmem:[%s2548_s16 + $0x178] sm:$0xff] }
 0x171   :  { %1734 = vmatpush3.bf16.msra.mxu0 %v1733_v39  ;;  %v1013_v39 = vld [vmem:[%s2548_s16 + $0x78] sm:$0xff] }
 0x172   :  { %229 = vst [vmem:[#allocation2 + $0x9] sm:$0xff] %v226_v45  ;;  %1549 = vmatprep.subr.mxu0 %v1864_v25 }
 0x179   :  { %v230_v49 = vld [vmem:[#allocation2] ss:$2 sm:$0xff]  ;;  %v239_v50 = vld [vmem:[#allocation2 + $0x1] ss:$2 sm:$0xff] }
 0x17a   :  { %v241_v51 = vld [vmem:[#allocation2 + $0x2] ss:$2 sm:$0xff]  ;;  %v237_v53 = vmul.f32 %v235_v48, %v230_v49  ;;  %243 = vst [vmem:[#allocation4 + $0x8] sm:$0xff] %v239_v50  ;;  %367 = vmatprep.mubr.f32.mxu1 %v239_v50  ;;  %v1359_v49 = vld [vmem:[%s2543_s8] ss:$0 sm:$0xff] }
 0x17b   :  { %v569_v48 = vld [vmem:[%s2542_s10] sm:$0xff] }
 0x17c   :  { %242 = vst [vmem:[#allocation4] sm:$0xff] %v237_v53  ;;  %368 = vmatmul.mubr.f32.vlgmr.msra.gmra.mrb[0].mxu1 %v237_v53 }
 0x17d   :  { %1695 = vmatpush3.bf16.msra.mxu1 %v1694_v52  ;;  %1519 = vmatprep.mubr.msk.f32.mxu1 %vm1865_vm4, %v1864_v25 }
 0x17e   :  { %1696 = vmatprep.subr.bf16.mxu1 %v1861_v2 }
 0x181   :  { %1698 = vmatpush3.bf16.msra.mxu1 %v1697_v56  ;;  %v744_v56 = vld [vmem:[%s2544_s13 + $0x8] sm:$0xff] }
 0x182   :  { %1699 = vmatprep.subr.bf16.mxu1 %v1861_v2 }
 0x185   :  { %1701 = vmatpush3.bf16.msra.mxu1 %v1700_v59  ;;  %v1739_v59 = vpack.c.bf16 %v747_v57, %v744_v56  ;;  %v1028_v56 = vld [vmem:[%s2548_s16 + $0xf0] sm:$0xff]  ;;  %v1031_v57 = vld [vmem:[%s2548_s16 + $0x108] sm:$0xff] }
 0x186   :  { %1702 = vmatprep.subr.bf16.mxu1 %v1861_v2  ;;  %v1779_v58 = vpack.c.bf16 %v1031_v57, %v1028_v56  ;;  %v1207_v56 = vld [vmem:[%s2550_s17 + $0x18] sm:$0xff]  ;;  %v1370_v57 = vld [vmem:[%s2551_s18] ss:$0 sm:$0xff] }
 0x189   :  { %1704 = vmatpush3.bf16.msra.mxu1 %v1703_v62 }
 0x18a   :  { %1705 = vmatprep.subr.bf16.mxu1 %v1861_v2 }
 0x18d   :  { %1707 = vmatpush3.bf16.msra.mxu1 %v1706_v1 }
 0x18e   :  { %1708 = vmatprep.subr.bf16.mxu1 %v1861_v2 }
 0x191   :  { %1710 = vmatpush3.bf16.msra.mxu1 %v1709_v5  ;;  %v750_v5 = vld [vmem:[%s2544_s13 + $0x38] sm:$0xff] }
 0x192   :  { %1711 = vmatprep.subr.bf16.mxu1 %v1861_v2  ;;  %v1743_v7 = vpack.c.bf16 %v753_v6, %v750_v5  ;;  %v1000_v5 = vld [vmem:[%s2548_s16 + $0x10] sm:$0xff]  ;;  %v1003_v6 = vld [vmem:[%s2548_s16 + $0x28] sm:$0xff] }
 0x195   :  { %1713 = vmatpush3.bf16.msra.mxu1 %v1712_v8  ;;  %v749_v8 = vld [vmem:[%s2544_s13 + $0x30] sm:$0xff] }
 0x196   :  { %1714 = vmatprep.subr.bf16.mxu1 %v1861_v2  ;;  %v1745_v10 = vpack.c.bf16 %v752_v9, %v749_v8  ;;  %v1009_v8 = vld [vmem:[%s2548_s16 + $0x58] sm:$0xff]  ;;  %v1789_v9 = vpack.c.bf16 %v1003_v6, %v1000_v5 }
 0x199   :  { %1716 = vmatpush3.bf16.msra.mxu1 %v1715_v11  ;;  %v1362_v11 = vld [vmem:[%s2546_s12] ss:$0 sm:$0xff] }
 0x19a   :  { %1740 = vmatprep.subr.bf16.mxu1 %v1739_v59  ;;  %v1035_v59 = vld [vmem:[%s2548_s16 + $0x128] sm:$0xff] }
 0x19c   :  { %1520 = vmatmul.mubr.f32.vlgmr.msra.gmra.mrb[2].mxu1 %v241_v51 }
 0x19d   :  { %822 = vmatprep.mubr.f32.mxu1 %v1864_v25  ;;  %1742 = vmatpush1.bf16.msra.mxu1 %v1741_v61  ;;  %v1781_v61 = vpack.c.bf16 %v1038_v60, %v1035_v59 }
 0x19e   :  { %1744 = vmatprep.subr.bf16.mxu1 %v1743_v7  ;;  %v1006_v7 = vld [vmem:[%s2548_s16 + $0x40] sm:$0xff] }
 0x19f   :  { %v1793_v13 = vpack.c.bf16 %v1009_v8, %v1006_v7 }
 0x1a1   :  { %1746 = vmatpush1.bf16.msra.mxu1 %v1745_v10 }
 0x1a2   :  { %1747 = vmatprep.subr.bf16.mxu1 %v1861_v2 }
 0x24f   :  { %v1411_v24 = vpop.f32.mrb[0].mxu1 }
 0x250   :  { %v1412_v26 = vpop.f32.mrb[1].mxu1 }
 0x251   :  { %v1413_v27 = vadd.f32 %v1412_v26, %v1411_v24  ;;  %v1002_v24 = vld [vmem:[%s2548_s16 + $0x20] sm:$0xff] }
 0x252   :  { %v1757_v26 = vpack.c.bf16 %v1002_v24, %v999_v23  ;;  %v1030_v23 = vld [vmem:[%s2548_s16 + $0x100] sm:$0xff]  ;;  %v1033_v24 = vld [vmem:[%s2548_s16 + $0x118] sm:$0xff] }
 0x253   :  { %v370_v29 = vadd.f32 %v1413_v27, %v1358_v28  ;;  %v1001_v27 = vld [vmem:[%s2548_s16 + $0x18] sm:$0xff] }
 0x26f   :  { %v439_v30 = vpop.f32.mrb[2].mxu1 }
 0x270   :  { %v440_v33 = vadd.f32 %v439_v30, %v370_v29  ;;  %v1521_v34 = vpop.f32.mrb[3].mxu1  ;;  %v1005_v29 = vld [vmem:[%s2548_s16 + $0x38] sm:$0xff]  ;;  %v1008_v30 = vld [vmem:[%s2548_s16 + $0x50] sm:$0xff] }
 0x271   :  { %v1761_v32 = vpack.c.bf16 %v1008_v30, %v1005_v29  ;;  %v1041_v29 = vld [vmem:[%s2548_s16 + $0x158] sm:$0xff]  ;;  %v1044_v30 = vld [vmem:[%s2548_s16 + $0x170] sm:$0xff] }
 0x272   :  { %v443_v38 = vmax.f32 %v440_v33, 0.0  ;;  %v1007_v33 = vld [vmem:[%s2548_s16 + $0x48] sm:$0xff] }
 0x273   :  { %v1763_v34 = vpack.c.bf16 %v1007_v33, %v1004_v31  ;;  %v1785_v31 = vpack.c.bf16 %v1044_v30, %v1041_v29  ;;  %v1043_v33 = vld [vmem:[%s2548_s16 + $0x168] sm:$0xff] }
 0x274   :  { %447 = vst.msk [vmem:[#allocation3 + $0x1] sm:$0xff] %vm446_vm6, %v443_v38  ;;  %v1010_v38 = vld [vmem:[%s2548_s16 + $0x60] sm:$0xff] }
 0x27b   :  { %v448_v41 = vld [vmem:[#allocation3] ss:$2 sm:$0xf]  ;;  %v457_v44 = vld [vmem:[#allocation3 + $0x1] ss:$2 sm:$0xf] }
 0x27c   :  { %v459_v42 = vld [vmem:[#allocation3 + $0x2] ss:$2 sm:$0xf]  ;;  %v455_v43 = vmul.f32 %v453_v40, %v448_v41  ;;  %463 = vrot.lane.b32.xlu0 %v457_v44, %s1867_s7  ;;  %v1767_v40 = vpack.c.bf16 %v1013_v39, %v1010_v38  ;;  %v1016_v44 = vld [vmem:[%s2548_s16 + $0x90] sm:$0xff] }
 0x27d   :  { %469 = vrot.lane.b32.xlu1 %v459_v42, %s1866_s3  ;;  %v1017_v41 = vld [vmem:[%s2548_s16 + $0x98] sm:$0xff]  ;;  %v1020_v42 = vld [vmem:[%s2548_s16 + $0xb0] sm:$0xff]  ;;  %v1367_v38 = vld [vmem:[%s2549_s15] ss:$0 sm:$0xff] }
 0x27e   :  { %461 = vst.msk [vmem:[#allocation4] sm:$0xf] %vm460_vm7, %v455_v43  ;;  %v1769_v43 = vpack.c.bf16 %v1020_v42, %v1017_v41 }
 0x2ee   :  { %v464_v46 = vpop.permute.xlu0 %463 }
 0x2ef   :  { %v470_v45 = vpop.permute.xlu1 %469  ;;  %467 = vst.msk [vmem:[#allocation4] sm:$0xf] %vm466_vm8, %v464_v46 }
 0x2f0   :  { %473 = vst.msk [vmem:[#allocation4] sm:$0xf] %vm472_vm9, %v470_v45  ;;  %v1019_v45 = vld [vmem:[%s2548_s16 + $0xa8] sm:$0xff] }
 0x2f1   :  { %v1771_v46 = vpack.c.bf16 %v1019_v45, %v1016_v44  ;;  %v1204_v45 = vld [vmem:[%s2550_s17] sm:$0xff] }
 0x2f7   :  { %v474_v47 = vld [vmem:[#allocation4] sm:$0xf] }
 0x2f8   :  { %1547 = vmatmul.mubr.msk.f32.vlgmr.msra.gmra.mrb[4].mxu0 %vm494_vm10, %v474_v47  ;;  %v1023_v47 = vld [vmem:[%s2548_s16 + $0xc8] sm:$0xff] }
 0x2f9   :  { %1551 = vmatprep.mubr.msk.f32.mxu0 %vm1865_vm4, %v1864_v25  ;;  %1550 = vmatpush3.msra.mxu0 %v569_v48  ;;  %v1026_v48 = vld [vmem:[%s2548_s16 + $0xe0] sm:$0xff] }
 0x2fa   :  { %1735 = vmatprep.subr.bf16.mxu0 %v1861_v2 }
 0x3cb   :  { %v564_v50 = vpop.f32.mrb[4].mxu0 }
 0x3cc   :  { %v565_v51 = vadd.f32 %v1359_v49, %v564_v50  ;;  %v1548_v52 = vpop.f32.mrb[5].mxu0  ;;  %v1773_v49 = vpack.c.bf16 %v1026_v48, %v1023_v47  ;;  %v1022_v50 = vld [vmem:[%s2548_s16 + $0xc0] sm:$0xff] }
 0x3ce   :  { %v568_v53 = vmax.f32 %v565_v51, 0.0  ;;  %v1025_v51 = vld [vmem:[%s2548_s16 + $0xd8] sm:$0xff] }
 0x3cf   :  { %v1775_v52 = vpack.c.bf16 %v1025_v51, %v1022_v50 }
 0x3d0   :  { %1552 = vmatmul.mubr.msk.f32.vlgmr.msra.gmra.mrb[6].mxu0 %vm570_vm11, %v568_v53  ;;  %v1029_v53 = vld [vmem:[%s2548_s16 + $0xf8] sm:$0xff] }
 0x3d1   :  { %1558 = vmatprep.mubr.msk.f32.mxu0 %vm1865_vm4, %v1864_v25 }
 0x4a3   :  { %v640_v54 = vpop.f32.mrb[6].mxu0 }
 0x4a4   :  { %644 = vst.msk [vmem:[#allocation5] sm:$0xf] %vm460_vm7, %v640_v54  ;;  %650 = vrot.lane.b32.xlu1 %v640_v54, %s1866_s3  ;;  %646 = vrot.lane.b32.xlu0 %v640_v54, %s1863_s25  ;;  %v1553_v55 = vpop.f32.mrb[7].mxu0  ;;  %v1032_v54 = vld [vmem:[%s2548_s16 + $0x110] sm:$0xff] }
 0x4a5   :  { %v1777_v55 = vpack.c.bf16 %v1032_v54, %v1029_v53 }
 0x516   :  { %v651_v62 = vpop.permute.xlu1 %650  ;;  %v647_v63 = vpop.permute.xlu0 %646 }
 0x517   :  { %653 = vst.msk [vmem:[#allocation5 + $0x8] sm:$0xf] %vm460_vm7, %v651_v62  ;;  %649 = vst.msk [vmem:[#allocation5 + $0x4] sm:$0xf] %vm460_vm7, %v647_v63  ;;  %v1034_v62 = vld [vmem:[%s2548_s16 + $0x120] sm:$0xff]  ;;  %v1037_v63 = vld [vmem:[%s2548_s16 + $0x138] sm:$0xff] }
 0x51e   :  { %v655_v0 = vld [vmem:[#allocation5] sm:$0xff]  ;;  %v656_v1 = vld [vmem:[#allocation5 + $0x8] sm:$0xf] }
 0x51f   :  { %v1736_v3 = vpack.c.bf16 %v656_v1, %v655_v0  ;;  %v1783_v0 = vpack.c.bf16 %v1037_v63, %v1034_v62 }
 0x521   :  { %1738 = vmatpush3.bf16.msk.msra.mxu0 %vm1737_vm14, %v1736_v3 }
 0x522   :  { %1758 = vmatprep.subr.bf16.mxu0 %v1757_v26  ;;  %v1036_v26 = vld [vmem:[%s2548_s16 + $0x130] sm:$0xff] }
 0x524   :  { %1559 = vmatmul.mubr.msk.f32.vlgmr.msra.gmra.mrb[8].mxu0 %vm664_vm15, %v654_v4 }
 0x525   :  { %1110 = vmatprep.mubr.f32.mxu0 %v1864_v25 }
 0x5f7   :  { %v738_v14 = vpop.f32.mrb[8].mxu0 }
 0x5f8   :  { %v739_v15 = vadd.f32 %v1362_v11, %v738_v14  ;;  %v1560_v16 = vpop.f32.mrb[9].mxu0  ;;  %v903_v11 = vld [vmem:[%s2547_s14 + $0x8] sm:$0xff]  ;;  %v1012_v14 = vld [vmem:[%s2548_s16 + $0x70] sm:$0xff] }
 0x5fa   :  { %v742_v18 = vmax.f32 %v739_v15, 0.0  ;;  %v1015_v15 = vld [vmem:[%s2548_s16 + $0x88] sm:$0xff] }
 0x5fb   :  { %v1797_v16 = vpack.c.bf16 %v1015_v15, %v1012_v14 }
 0x5fc   :  { %1365 = vmatmul.mubr.msk.f32.vlgmr.msra.gmra.mrb[4].mxu1 %vm446_vm6, %v742_v18 }
 0x5fd   :  { %1749 = vmatpush3.bf16.msra.mxu1 %v1748_v17  ;;  %1569 = vmatprep.mubr.msk.f32.mxu1 %vm1865_vm4, %v1864_v25  ;;  %v1018_v17 = vld [vmem:[%s2548_s16 + $0xa0] sm:$0xff] }
 0x5fe   :  { %1750 = vmatprep.subr.bf16.mxu1 %v1861_v2  ;;  %v998_v2 = vld [vmem:[%s2548_s16] sm:$0xff] }
 0x5ff   :  { %v1759_v28 = vpack.c.bf16 %v1001_v27, %v998_v2  ;;  %v1809_v2 = vpack.c.bf16 %v1033_v24, %v1030_v23  ;;  %v1039_v27 = vld [vmem:[%s2548_s16 + $0x148] sm:$0xff] }
 0x601   :  { %1752 = vmatpush3.bf16.msra.mxu1 %v1751_v21  ;;  %1760 = vmatpush1.bf16.msra.mxu0 %v1759_v28  ;;  %v1027_v21 = vld [vmem:[%s2548_s16 + $0xe8] sm:$0xff]  ;;  %v1813_v28 = vpack.c.bf16 %v1039_v27, %v1036_v26 }
 0x602   :  { %1762 = vmatprep.subr.bf16.mxu0 %v1761_v32  ;;  %v1040_v32 = vld [vmem:[%s2548_s16 + $0x150] sm:$0xff] }
 0x604   :  { %1570 = vmatmul.mubr.msk.f32.vlgmr.msra.gmra.mrb[6].mxu1 %vm446_vm6, %v742_v18  ;;  %v1021_v18 = vld [vmem:[%s2548_s16 + $0xb8] sm:$0xff] }
 0x605   :  { %1578 = vmatprep.mubr.msk.f32.mxu1 %vm914_vm0, %v902_v22  ;;  %1764 = vmatpush1.bf16.msra.mxu0 %v1763_v34  ;;  %v1801_v19 = vpack.c.bf16 %v1021_v18, %v1018_v17  ;;  %v1805_v22 = vpack.c.bf16 %v1027_v21, %v1024_v20  ;;  %v1787_v34 = vpack.c.bf16 %v1043_v33, %v1040_v32 }
 0x606   :  { %1766 = vmatprep.subr.bf16.mxu0 %v1765_v37  ;;  %v1817_v37 = vpack.c.bf16 %v1045_v36, %v1042_v35 }
 0x609   :  { %1768 = vmatpush1.bf16.msra.mxu0 %v1767_v40 }
 0x60a   :  { %1770 = vmatprep.subr.bf16.mxu0 %v1769_v43 }
 0x60d   :  { %1772 = vmatpush1.bf16.msra.mxu0 %v1771_v46 }
 0x60e   :  { %1774 = vmatprep.subr.bf16.mxu0 %v1773_v49 }
 0x611   :  { %1776 = vmatpush1.bf16.msra.mxu0 %v1775_v52 }
 0x612   :  { %1778 = vmatprep.subr.bf16.mxu0 %v1777_v55  ;;  %v1206_v55 = vld [vmem:[%s2550_s17 + $0x10] sm:$0xff] }
 0x615   :  { %1780 = vmatpush1.bf16.msra.mxu0 %v1779_v58 }
 0x616   :  { %1782 = vmatprep.subr.bf16.mxu0 %v1781_v61 }
 0x619   :  { %1784 = vmatpush1.bf16.msra.mxu0 %v1783_v0 }
 0x61a   :  { %1786 = vmatprep.subr.bf16.mxu0 %v1785_v31 }
 0x61d   :  { %1788 = vmatpush1.bf16.msra.mxu0 %v1787_v34 }
 0x6cf   :  { %v824_v1 = vpop.f32.mrb[4].mxu1 }
 0x6d0   :  { %v826_v3 = vpop.f32.mrb[5].mxu1 }
 0x6d1   :  { %v1753_v4 = vpack.c.bf16 %v826_v3, %v824_v1 }
 0x6d3   :  { %1754 = vmatprep.subr.bf16.mxu1 %v1753_v4 }
 0x6d4   :  { %1756 = vmatpush3.bf16.msra.mxu1 %v1753_v4 }
 0x6d7   :  { %v895_v10 = vpop.f32.mrb[6].mxu1 }
 0x6d8   :  { %v1571_v12 = vpop.f32.mrb[7].mxu1  ;;  %1576 = vmatprep.subr.mxu1 %v895_v10 }
 0x6d9   :  { %1577 = vmatpush3.msra.mxu1 %v895_v10 }
 0x6da   :  { %1579 = vmatmul.mubr.msk.f32.vlgmr.msra.gmra.mrb[8].mxu1 %vm914_vm0, %v903_v11  ;;  %1790 = vmatprep.subr.bf16.mxu1 %v1789_v9 }
 0x6db   :  { %1792 = vmatpush3.bf16.msra.mxu1 %v1789_v9 }
 0x6dc   :  { %1794 = vmatprep.subr.bf16.mxu1 %v1793_v13 }
 0x6df   :  { %1796 = vmatpush3.bf16.msra.mxu1 %v1793_v13 }
 0x6e0   :  { %1798 = vmatprep.subr.bf16.mxu1 %v1797_v16 }
 0x6e3   :  { %1800 = vmatpush3.bf16.msra.mxu1 %v1797_v16 }
 0x6e4   :  { %1802 = vmatprep.subr.bf16.mxu1 %v1801_v19 }
 0x6e7   :  { %1804 = vmatpush3.bf16.msra.mxu1 %v1801_v19 }
 0x6e8   :  { %1806 = vmatprep.subr.bf16.mxu1 %v1805_v22 }
 0x6eb   :  { %1808 = vmatpush3.bf16.msra.mxu1 %v1805_v22 }
 0x6ec   :  { %1810 = vmatprep.subr.bf16.mxu1 %v1809_v2 }
 0x6ef   :  { %1812 = vmatpush3.bf16.msra.mxu1 %v1809_v2 }
 0x6f0   :  { %1814 = vmatprep.subr.bf16.mxu1 %v1813_v28 }
 0x6f3   :  { %1816 = vmatpush3.bf16.msra.mxu1 %v1813_v28 }
 0x6f4   :  { %1818 = vmatprep.subr.bf16.mxu1 %v1817_v37 }
 0x6f7   :  { %1820 = vmatpush3.bf16.msra.mxu1 %v1817_v37 }
 0x7ad   :  { %v1580_v39 = vpop.f32.mrb[8].mxu1 }
 0x7ae   :  { %v993_v40 = vadd.f32 %v1580_v39, %v1367_v38  ;;  %v987_v41 = vpop.f32.mrb[9].mxu1 }
 0x7af   :  { %v988_v42 = vadd.f32 %v1367_v38, %v987_v41 }
 0x7b0   :  { %v997_v44 = vmax.f32 %v993_v40, 0.0 }
 0x7b1   :  { %v996_v43 = vmax.f32 %v988_v42, 0.0 }
 0x7b3   :  { %1111 = vmatmul.mubr.f32.vlgmr.msra.gmra.mrb[10].mxu0 %v996_v43  ;;  %1613 = vmatprep.mubr.f32.mxu1 %v996_v43 }
 0x7b4   :  { %1614 = vmatmul.mubr.f32.vlgmr.msra.gmra.mrb[10].mxu1 %v997_v44  ;;  %1116 = vmatprep.mubr.f32.mxu0 %v1864_v25  ;;  %v1205_v25 = vld [vmem:[%s2550_s17 + $0x8] sm:$0xff] }
 0x7b7   :  { %1117 = vmatmul.mubr.f32.gmra.mrb[12].mxu0 %v997_v44 }
 0x7b8   :  { %1628 = vmatprep.mubr.msk.f32.mxu0 %vm87_vm1, %v1204_v45 }
 0x886   :  { %v1112_v46 = vpop.f32.mrb[10].mxu0 }
 0x887   :  { %1198 = vst [vmem:[#allocation5] sm:$0xff] %v1112_v46  ;;  %v1114_v47 = vpop.f32.mrb[11].mxu0  ;;  %v1615_v48 = vpop.f32.mrb[10].mxu1 }
 0x888   :  { %v1189_v49 = vpop.f32.mrb[11].mxu1 }
 0x889   :  { %v1829_v50 = vpack.c.bf16 %v1615_v48, %v1189_v49 }
 0x88a   :  { %v1118_v51 = vpop.f32.mrb[12].mxu0 }
 0x88b   :  { %1199 = vst [vmem:[#allocation5 + $0x8] sm:$0xff] %v1118_v51  ;;  %v1120_v52 = vpop.f32.mrb[13].mxu0  ;;  %v1821_v53 = vpack.c.bf16 %v1118_v51, %v1112_v46 }
 0x88c   :  { %v1825_v54 = vpack.c.bf16 %v1120_v52, %v1114_v47 }
 0x88d   :  { %1822 = vmatprep.subr.bf16.mxu0 %v1821_v53 }
 0x88e   :  { %1824 = vmatpush3.bf16.msra.mxu0 %v1821_v53 }
 0x88f   :  { %1826 = vmatprep.subr.bf16.mxu0 %v1825_v54 }
 0x892   :  { %1828 = vmatpush3.bf16.msra.mxu0 %v1825_v54 }
 0x893   :  { %1830 = vmatprep.subr.bf16.mxu0 %v1829_v50 }
 0x896   :  { %1832 = vmatpush3.bf16.msra.mxu0 %v1829_v50 }
 0x899   :  { %1629 = vmatmul.mubr.msk.f32.vlgmr.msra.gmra.mrb[14].mxu0 %vm87_vm1, %v1205_v25 }
 0x89a   :  { %1631 = vmatprep.mubr.msk.f32.mxu0 %vm87_vm1, %v1206_v55 }
 0x89d   :  { %1632 = vmatmul.mubr.msk.f32.gmra.mrb[16].mxu0 %vm87_vm1, %v1207_v56 }
 0x96c   :  { %v1630_v58 = vpop.f32.mrb[14].mxu0 }
 0x96d   :  { %v1305_v59 = vadd.f32 %v1630_v58, %v1370_v57  ;;  %v1299_v60 = vpop.f32.mrb[15].mxu0 }
 0x96e   :  { %v1300_v61 = vadd.f32 %v1370_v57, %v1299_v60 }
 0x96f   :  { %v1376_v62 = vmul.f32 -1.442695, %v1305_v59 }
 0x970   :  { %v1375_v63 = vmul.f32 -1.442695, %v1300_v61  ;;  %v1633_v0 = vpop.f32.mrb[16].mxu0 }
 0x971   :  { %1844 = vpow2.f32 %v1376_v62  ;;  %v1315_v1 = vadd.f32 %v1633_v0, %v1370_v57  ;;  %v1309_v3 = vpop.f32.mrb[17].mxu0 }
 0x972   :  { %1846 = vpow2.f32 %v1375_v63  ;;  %v1310_v4 = vadd.f32 %v1370_v57, %v1309_v3 }
 0x973   :  { %v1378_v5 = vmul.f32 -1.442695, %v1315_v1 }
 0x974   :  { %v1377_v6 = vmul.f32 -1.442695, %v1310_v4 }
 0x975   :  { %1848 = vpow2.f32 %v1378_v5 }
 0x976   :  { %1850 = vpow2.f32 %v1377_v6 }
 0x97b   :  { %v1845_v7 = vpop.eup %1844 }
 0x97c   :  { %v1847_v8 = vpop.eup %1846  ;;  %v1331_v9 = vadd.f32 1.0, %v1845_v7 }
 0x97d   :  { %v1330_v10 = vadd.f32 1.0, %v1847_v8 }
 0x97e   :  { %1852 = vrcp.f32 %v1331_v9 }
 0x97f   :  { %v1849_v11 = vpop.eup %1848  ;;  %1854 = vrcp.f32 %v1330_v10 }
 0x980   :  { %v1851_v12 = vpop.eup %1850  ;;  %v1333_v13 = vadd.f32 1.0, %v1849_v11 }
 0x981   :  { %v1332_v14 = vadd.f32 1.0, %v1851_v12 }
 0x982   :  { %1856 = vrcp.f32 %v1333_v13 }
 0x983   :  { %1858 = vrcp.f32 %v1332_v14 }
 0x988   :  { %v1853_v15 = vpop.eup %1852 }
 0x989   :  { %v1855_v16 = vpop.eup %1854  ;;  %1343 = vst [vmem:[%s2552_s19 + $0x8] sm:$0xff] %v1853_v15 }
 0x98a   :  { %1342 = vst [vmem:[%s2552_s19] sm:$0xff] %v1855_v16 }
 0x98c   :  { %v1857_v17 = vpop.eup %1856 }
 0x98d   :  { %v1859_v18 = vpop.eup %1858  ;;  %1345 = vst [vmem:[%s2552_s19 + $0x18] sm:$0xff] %v1857_v17 }
 0x98e   :  { %1344 = vst [vmem:[%s2552_s19 + $0x10] sm:$0xff] %v1859_v18 }

</bundles_post_ra>
